<compile_context>
chip_gen: v5e
topology: v5e:2x2
jax: 0.10.0
libtpu: 0.0.40
codegen_flags: <defaults>
</compile_context>

<pallas_src>
import functools

import jax
import jax.numpy as jnp
from jax.experimental import pallas as pl
from jax.experimental.pallas import tpu as pltpu

DT = 0.05
FORCE_MAG = 100.0
LANE = 128


# --------------------------------------------------------------------------- #
# Parameter preprocessing / tiling helpers
# --------------------------------------------------------------------------- #
def _derived_scalars(params):
    """[g, mp*l, 1/tm, 1/l, mp/tm, mp*l/tm] as an f32 vector (SMEM resident)."""
    params = jnp.asarray(params, jnp.float32)
    gravity, masscart, masspole, length = (params[i] for i in range(4))
    total_mass = masscart + masspole
    return jnp.stack([
        gravity,
        masspole * length,
        1.0 / total_mass,
        1.0 / length,
        masspole / total_mass,
        masspole * length / total_mass,
    ]).astype(jnp.float32)


def _tiling(batch, block_rows):
    """Return (rows, tile_rows): rows*128 >= batch, rows % tile_rows == 0."""
    assert block_rows % 8 == 0 and block_rows > 0
    rows = pl.cdiv(batch, LANE)
    rows = ((rows + 7) // 8) * 8            # always full (8,128) sublane tiles
    if rows <= block_rows:
        return rows, rows                   # single tile covers the batch
    # Batch spans several tiles: keep >=2 programs so the ("parallel",) grid
    # axis shards across v7x's two TensorCores; cap tile at block_rows.
    half = ((rows + 15) // 16) * 8          # ceil(rows/2) rounded up to 8
    tile_r = min(block_rows, half)
    rows = pl.cdiv(rows, tile_r) * tile_r
    return rows, tile_r


# --------------------------------------------------------------------------- #
# Shared dynamics math (operates on (tile_rows, 128) lane-dense blocks)
# --------------------------------------------------------------------------- #
def _dynamics(scal_ref, x, dx, cos_th, sin_th, dth, u_raw):
    gravity = scal_ref[0]        # g
    pml = scal_ref[1]            # masspole * length
    inv_tm = scal_ref[2]         # 1 / total_mass
    inv_len = scal_ref[3]        # 1 / length
    mp_over_tm = scal_ref[4]     # masspole / total_mass
    pml_over_tm = scal_ref[5]    # masspole * length / total_mass

    u = jnp.clip(u_raw, -FORCE_MAG, FORCE_MAG)

    cart_in = (u + pml * dth * dth * sin_th) * inv_tm
    denom = 4.0 / 3.0 - mp_over_tm * cos_th * cos_th
    th_acc = (gravity * sin_th - cos_th * cart_in) * inv_len / denom
    xacc = cart_in - pml_over_tm * th_acc * cos_th

    # PyTorch: th = atan2(sin_th, cos_th); th += DT*dth; emit cos(th), sin(th).
    # Equivalent: rotate the normalized (cos_th, sin_th) by a = DT*dth.
    # Guard r^2 so padded (all-zero) rows stay finite; they are sliced away.
    r2 = jnp.maximum(cos_th * cos_th + sin_th * sin_th, 1e-12)
    inv_r = jax.lax.rsqrt(r2)
    a = DT * dth
    ca = jnp.cos(a) * inv_r
    sa = jnp.sin(a) * inv_r

    return (x + DT * dx,
            dx + DT * xacc,
            cos_th * ca - sin_th * sa,
            sin_th * ca + cos_th * sa,
            dth + DT * th_acc)


# --------------------------------------------------------------------------- #
# Single-step kernel
# --------------------------------------------------------------------------- #
def cartpole_dx_kernel(scal_ref, state_ref, u_ref, out_ref):
    nx, ndx, ncos, nsin, ndth = _dynamics(
        scal_ref,
        state_ref[0], state_ref[1], state_ref[2], state_ref[3], state_ref[4],
        u_ref[0])
    out_ref[0] = nx
    out_ref[1] = ndx
    out_ref[2] = ncos
    out_ref[3] = nsin
    out_ref[4] = ndth


def cartpole_dx_slab(scal, state_slab, u_slab, *, tile_r, cost_estimate=None):
    """Slab-native entry point: state_slab (5, rows, 128), u_slab (1, rows, 128)."""
    rows = state_slab.shape[1]
    grid = (rows // tile_r,)
    return pl.pallas_call(
        cartpole_dx_kernel,
        out_shape=jax.ShapeDtypeStruct((5, rows, LANE), state_slab.dtype),
        grid=grid,
        in_specs=[
            pl.BlockSpec(memory_space=pltpu.MemorySpace.SMEM),      # scalars (6,)
            pl.BlockSpec((5, tile_r, LANE), lambda i: (0, i, 0)),   # state slab
            pl.BlockSpec((1, tile_r, LANE), lambda i: (0, i, 0)),   # control slab
        ],
        out_specs=pl.BlockSpec((5, tile_r, LANE), lambda i: (0, i, 0)),
        compiler_params=pltpu.CompilerParams(
            dimension_semantics=("parallel",)),
        cost_estimate=cost_estimate,
    )(scal, state_slab, u_slab)


@functools.partial(jax.jit, static_argnames=("block_rows",))
def cartpole_dx(params, state, u, block_rows=512):
    """params: (4,) [gravity, masscart, masspole, length]; state: (B,5); u: (B,1)."""
    B = state.shape[0]
    state = state.astype(jnp.float32)   # kernel math is f32 (matches the module)
    u = u.astype(jnp.float32)

    rows, tile_r = _tiling(B, block_rows)
    b_pad = rows * LANE
    pad = b_pad - B

    # Two separate lane-dense slabs (no concatenate): batch b -> (b//128, b%128).
    state_slab = jnp.pad(state, ((0, pad), (0, 0))).T.reshape(5, rows, LANE)
    u_slab = jnp.pad(u[:, 0], (0, pad)).reshape(1, rows, LANE)
    scal = _derived_scalars(params)

    cost = pl.CostEstimate(flops=40 * b_pad, transcendentals=4 * b_pad,
                           bytes_accessed=44 * b_pad)
    out3 = cartpole_dx_slab(scal, state_slab, u_slab,
                            tile_r=tile_r, cost_estimate=cost)

    # Slice the padded tail away *before* transposing back to (B, 5).
    return out3.reshape(5, b_pad)[:, :B].T


# --------------------------------------------------------------------------- #
# Fused multi-step rollout: state slab stays resident in VMEM across timesteps
# --------------------------------------------------------------------------- #
def cartpole_rollout_kernel(scal_ref, state_ref, u_ref, traj_ref, st_ref):
    @pl.when(pl.program_id(1) == 0)
    def _():
        st_ref[...] = state_ref[...]          # load initial state for this tile

    nx, ndx, ncos, nsin, ndth = _dynamics(
        scal_ref,
        st_ref[0], st_ref[1], st_ref[2], st_ref[3], st_ref[4],
        u_ref[0])
    st_ref[0] = nx
    st_ref[1] = ndx
    st_ref[2] = ncos
    st_ref[3] = nsin
    st_ref[4] = ndth
    traj_ref[0] = st_ref[...]


@functools.partial(jax.jit, static_argnames=("block_rows",))
def cartpole_rollout(params, state, u_seq, block_rows=512):
    """state: (B,5); u_seq: (T,B,1) -> trajectory of post-step states (T,B,5)."""
    T, B, _ = u_seq.shape
    state = state.astype(jnp.float32)
    u_seq = u_seq.astype(jnp.float32)

    rows, tile_r = _tiling(B, block_rows)
    b_pad = rows * LANE
    pad = b_pad - B

    state_slab = jnp.pad(state, ((0, pad), (0, 0))).T.reshape(5, rows, LANE)
    u_slab = jnp.pad(u_seq[:, :, 0], ((0, 0), (0, pad))).reshape(T, rows, LANE)
    scal = _derived_scalars(params)

    grid = (rows // tile_r, T)
    traj = pl.pallas_call(
        cartpole_rollout_kernel,
        out_shape=jax.ShapeDtypeStruct((T, 5, rows, LANE), jnp.float32),
        grid=grid,
        in_specs=[
            pl.BlockSpec(memory_space=pltpu.MemorySpace.SMEM),
            pl.BlockSpec((5, tile_r, LANE), lambda i, t: (0, i, 0)),
            pl.BlockSpec((1, tile_r, LANE), lambda i, t: (t, i, 0)),
        ],
        out_specs=pl.BlockSpec((1, 5, tile_r, LANE), lambda i, t: (t, 0, i, 0)),
        scratch_shapes=[pltpu.VMEM((5, tile_r, LANE), jnp.float32)],
        compiler_params=pltpu.CompilerParams(
            dimension_semantics=("parallel", "arbitrary")),
        cost_estimate=pl.CostEstimate(flops=40 * b_pad * T,
                                      transcendentals=4 * b_pad * T,
                                      bytes_accessed=(4 + 24) * b_pad * T),
    )(scal, state_slab, u_slab)

    return traj.reshape(T, 5, b_pad)[:, :, :B].transpose(0, 2, 1)


# --------------------------------------------------------------------------- #
# Plain-JAX reference mirroring the PyTorch forward exactly
# --------------------------------------------------------------------------- #
def cartpole_dx_ref(params, state, u):
    gravity, masscart, masspole, length = params
    total_mass = masspole + masscart
    polemass_length = masspole * length
    uc = jnp.clip(u[:, 0], -FORCE_MAG, FORCE_MAG)
    x, dx, cos_th, sin_th, dth = (state[:, i] for i in range(5))
    th = jnp.arctan2(sin_th, cos_th)
    cart_in = (uc + polemass_length * dth ** 2 * sin_th) / total_mass
    th_acc = (gravity * sin_th - cos_th * cart_in) / (
        length * (4.0 / 3.0 - masspole * cos_th ** 2 / total_mass))
    xacc = cart_in - polemass_length * th_acc * cos_th / total_mass
    x = x + DT * dx
    dx = dx + DT * xacc
    th = th + DT * dth
    dth = dth + DT * th_acc
    return jnp.stack([x, dx, jnp.cos(th), jnp.sin(th), dth], axis=1)


def cartpole_rollout_ref(params, state, u_seq):
    outs = []
    for t in range(u_seq.shape[0]):
        state = cartpole_dx_ref(params, state, u_seq[t])
        outs.append(state)
    return jnp.stack(outs, axis=0)


if __name__ == "__main__":
    key = jax.random.PRNGKey(0)
    k1, k2, k3, k4, k5, k6 = jax.random.split(key, 6)

    # Module default params: Variable((9.8, 1.0, 0.1, 0.5)).
    params = jnp.array([9.8, 1.0, 0.1, 0.5], dtype=jnp.float32)

    # --- single-step check (B = 256) -------------------------------------- #
    B = 256
    theta = jax.random.uniform(k1, (B,), minval=-jnp.pi, maxval=jnp.pi)
    x0 = jax.random.uniform(k2, (B,), minval=-2.0, maxval=2.0)
    dx0 = jax.random.uniform(k3, (B,), minval=-3.0, maxval=3.0)
    dth0 = jax.random.uniform(k4, (B,), minval=-3.0, maxval=3.0)
    state = jnp.stack(
        [x0, dx0, jnp.cos(theta), jnp.sin(theta), dth0], axis=1
    ).astype(jnp.float32)
    # Some controls exceed force_mag to exercise the clamp.
    u = jax.random.uniform(k5, (B, 1), minval=-150.0, maxval=150.0
                           ).astype(jnp.float32)

    out = jax.block_until_ready(cartpole_dx(params, state, u))
    ref = cartpole_dx_ref(params, state, u)
    assert out.shape == (B, 5) and out.dtype == jnp.float32
    assert jnp.allclose(out, ref, rtol=1e-4, atol=1e-4), (
        f"single-step max abs err {jnp.max(jnp.abs(out - ref))}")

    # --- multi-tile path (small block_rows forces a 2-program grid) ------- #
    B2 = 1200
    theta2 = jax.random.uniform(k6, (B2,), minval=-jnp.pi, maxval=jnp.pi)
    state2 = jnp.stack(
        [jnp.linspace(-2.0, 2.0, B2), jnp.linspace(-3.0, 3.0, B2),
         jnp.cos(theta2), jnp.sin(theta2), jnp.linspace(-3.0, 3.0, B2)],
        axis=1).astype(jnp.float32)
    u2 = jnp.linspace(-150.0, 150.0, B2).reshape(B2, 1).astype(jnp.float32)
    out2 = jax.block_until_ready(cartpole_dx(params, state2, u2, block_rows=8))
    ref2 = cartpole_dx_ref(params, state2, u2)
    assert jnp.allclose(out2, ref2, rtol=1e-4, atol=1e-4), (
        f"multi-tile max abs err {jnp.max(jnp.abs(out2 - ref2))}")

    # --- fused rollout (state resident in VMEM across T steps) ------------ #
    T = 8
    u_seq = jax.random.uniform(jax.random.fold_in(key, 7), (T, B, 1),
                               minval=-150.0, maxval=150.0).astype(jnp.float32)
    traj = jax.block_until_ready(cartpole_rollout(params, state, u_seq))
    traj_ref = cartpole_rollout_ref(params, state, u_seq)
    assert traj.shape == (T, B, 5)
    assert jnp.allclose(traj, traj_ref, rtol=1e-3, atol=1e-3), (
        f"rollout max abs err {jnp.max(jnp.abs(traj - traj_ref))}")

    print("KERNEL_OK")
</pallas_src>

<mosaic_0001>
module attributes {stable_mosaic.version = 11 : i64} {
  func.func @cartpole_dx_kernel(%arg0: i32, %arg1: memref<6xf32, #tpu.memory_space<smem>>, %arg2: memref<5x8x128xf32, #tpu.memory_space<vmem>>, %arg3: memref<1x8x128xf32, #tpu.memory_space<vmem>>, %arg4: memref<5x8x128xf32, #tpu.memory_space<vmem>>) attributes {dimension_semantics = [#tpu.dimension_semantics<parallel>], iteration_bounds = array<i64: 1>, scalar_prefetch = 0 : i64, scratch_operands = 0 : i64, tpu.core_type = #tpu.core_type<tc>, window_params = [{transform_indices = @transform_0, window_bounds = array<i64: 6>}, {transform_indices = @transform_1, window_bounds = array<i64: 5, 8, 128>}, {transform_indices = @transform_2, window_bounds = array<i64: 1, 8, 128>}, {transform_indices = @transform_3, window_bounds = array<i64: 5, 8, 128>}]} {
    %c0 = arith.constant 0 : index
    %c0_0 = arith.constant 0 : index
    %c0_1 = arith.constant 0 : index
    %0 = vector.load %arg2[%c0, %c0_0, %c0_1] : memref<5x8x128xf32, #tpu.memory_space<vmem>>, vector<1x8x128xf32>
    %1 = vector.shape_cast %0 : vector<1x8x128xf32> to vector<8x128xf32>
    %c1 = arith.constant 1 : index
    %c0_2 = arith.constant 0 : index
    %c0_3 = arith.constant 0 : index
    %2 = vector.load %arg2[%c1, %c0_2, %c0_3] : memref<5x8x128xf32, #tpu.memory_space<vmem>>, vector<1x8x128xf32>
    %3 = vector.shape_cast %2 : vector<1x8x128xf32> to vector<8x128xf32>
    %c2 = arith.constant 2 : index
    %c0_4 = arith.constant 0 : index
    %c0_5 = arith.constant 0 : index
    %4 = vector.load %arg2[%c2, %c0_4, %c0_5] : memref<5x8x128xf32, #tpu.memory_space<vmem>>, vector<1x8x128xf32>
    %5 = vector.shape_cast %4 : vector<1x8x128xf32> to vector<8x128xf32>
    %c3 = arith.constant 3 : index
    %c0_6 = arith.constant 0 : index
    %c0_7 = arith.constant 0 : index
    %6 = vector.load %arg2[%c3, %c0_6, %c0_7] : memref<5x8x128xf32, #tpu.memory_space<vmem>>, vector<1x8x128xf32>
    %7 = vector.shape_cast %6 : vector<1x8x128xf32> to vector<8x128xf32>
    %c4 = arith.constant 4 : index
    %c0_8 = arith.constant 0 : index
    %c0_9 = arith.constant 0 : index
    %8 = vector.load %arg2[%c4, %c0_8, %c0_9] : memref<5x8x128xf32, #tpu.memory_space<vmem>>, vector<1x8x128xf32>
    %9 = vector.shape_cast %8 : vector<1x8x128xf32> to vector<8x128xf32>
    %c0_10 = arith.constant 0 : index
    %c0_11 = arith.constant 0 : index
    %c0_12 = arith.constant 0 : index
    %10 = vector.load %arg3[%c0_10, %c0_11, %c0_12] : memref<1x8x128xf32, #tpu.memory_space<vmem>>, vector<1x8x128xf32>
    %11 = vector.shape_cast %10 : vector<1x8x128xf32> to vector<8x128xf32>
    %c0_13 = arith.constant 0 : index
    %12 = memref.load %arg1[%c0_13] : memref<6xf32, #tpu.memory_space<smem>>
    %c1_14 = arith.constant 1 : index
    %13 = memref.load %arg1[%c1_14] : memref<6xf32, #tpu.memory_space<smem>>
    %c2_15 = arith.constant 2 : index
    %14 = memref.load %arg1[%c2_15] : memref<6xf32, #tpu.memory_space<smem>>
    %c3_16 = arith.constant 3 : index
    %15 = memref.load %arg1[%c3_16] : memref<6xf32, #tpu.memory_space<smem>>
    %c4_17 = arith.constant 4 : index
    %16 = memref.load %arg1[%c4_17] : memref<6xf32, #tpu.memory_space<smem>>
    %c5 = arith.constant 5 : index
    %17 = memref.load %arg1[%c5] : memref<6xf32, #tpu.memory_space<smem>>
    %cst = arith.constant -1.000000e+02 : f32
    %cst_18 = arith.constant 1.000000e+02 : f32
    %18 = vector.broadcast %cst : f32 to vector<8x128xf32>
    %19 = arith.maximumf %18, %11 : vector<8x128xf32>
    %20 = vector.broadcast %cst_18 : f32 to vector<8x128xf32>
    %21 = arith.minimumf %20, %19 : vector<8x128xf32>
    %22 = vector.broadcast %13 : f32 to vector<8x128xf32>
    %23 = arith.mulf %22, %9 : vector<8x128xf32>
    %24 = arith.mulf %23, %9 : vector<8x128xf32>
    %25 = arith.mulf %24, %7 : vector<8x128xf32>
    %26 = arith.addf %21, %25 : vector<8x128xf32>
    %27 = vector.broadcast %14 : f32 to vector<8x128xf32>
    %28 = arith.mulf %26, %27 : vector<8x128xf32>
    %29 = vector.broadcast %16 : f32 to vector<8x128xf32>
    %30 = arith.mulf %29, %5 : vector<8x128xf32>
    %31 = arith.mulf %30, %5 : vector<8x128xf32>
    %cst_19 = arith.constant 1.33333337 : f32
    %32 = vector.broadcast %cst_19 : f32 to vector<8x128xf32>
    %33 = arith.subf %32, %31 : vector<8x128xf32>
    %34 = vector.broadcast %12 : f32 to vector<8x128xf32>
    %35 = arith.mulf %34, %7 : vector<8x128xf32>
    %36 = arith.mulf %5, %28 : vector<8x128xf32>
    %37 = arith.subf %35, %36 : vector<8x128xf32>
    %38 = vector.broadcast %15 : f32 to vector<8x128xf32>
    %39 = arith.mulf %37, %38 : vector<8x128xf32>
    %40 = arith.divf %39, %33 : vector<8x128xf32>
    %41 = vector.broadcast %17 : f32 to vector<8x128xf32>
    %42 = arith.mulf %41, %40 : vector<8x128xf32>
    %43 = arith.mulf %42, %5 : vector<8x128xf32>
    %44 = arith.subf %28, %43 : vector<8x128xf32>
    %45 = arith.mulf %5, %5 : vector<8x128xf32>
    %46 = arith.mulf %7, %7 : vector<8x128xf32>
    %47 = arith.addf %45, %46 : vector<8x128xf32>
    %cst_20 = arith.constant 9.99999996E-13 : f32
    %48 = vector.broadcast %cst_20 : f32 to vector<8x128xf32>
    %49 = arith.maximumf %47, %48 : vector<8x128xf32>
    %50 = math.rsqrt %49 : vector<8x128xf32>
    %cst_21 = arith.constant 5.000000e-02 : f32
    %51 = vector.broadcast %cst_21 : f32 to vector<8x128xf32>
    %52 = arith.mulf %51, %9 : vector<8x128xf32>
    %53 = math.cos %52 : vector<8x128xf32>
    %54 = arith.mulf %53, %50 : vector<8x128xf32>
    %55 = math.sin %52 : vector<8x128xf32>
    %56 = arith.mulf %55, %50 : vector<8x128xf32>
    %cst_22 = arith.constant 5.000000e-02 : f32
    %57 = vector.broadcast %cst_22 : f32 to vector<8x128xf32>
    %58 = arith.mulf %57, %3 : vector<8x128xf32>
    %59 = arith.addf %1, %58 : vector<8x128xf32>
    %cst_23 = arith.constant 5.000000e-02 : f32
    %60 = vector.broadcast %cst_23 : f32 to vector<8x128xf32>
    %61 = arith.mulf %60, %44 : vector<8x128xf32>
    %62 = arith.addf %3, %61 : vector<8x128xf32>
    %63 = arith.mulf %5, %54 : vector<8x128xf32>
    %64 = arith.mulf %7, %56 : vector<8x128xf32>
    %65 = arith.subf %63, %64 : vector<8x128xf32>
    %66 = arith.mulf %7, %54 : vector<8x128xf32>
    %67 = arith.mulf %5, %56 : vector<8x128xf32>
    %68 = arith.addf %66, %67 : vector<8x128xf32>
    %cst_24 = arith.constant 5.000000e-02 : f32
    %69 = vector.broadcast %cst_24 : f32 to vector<8x128xf32>
    %70 = arith.mulf %69, %40 : vector<8x128xf32>
    %71 = arith.addf %9, %70 : vector<8x128xf32>
    %c0_25 = arith.constant 0 : index
    %c0_26 = arith.constant 0 : index
    %c0_27 = arith.constant 0 : index
    %72 = vector.load %arg4[%c0_25, %c0_26, %c0_27] : memref<5x8x128xf32, #tpu.memory_space<vmem>>, vector<1x8x128xf32>
    %73 = vector.shape_cast %72 : vector<1x8x128xf32> to vector<8x128xf32>
    %74 = vector.shape_cast %59 : vector<8x128xf32> to vector<1x8x128xf32>
    tpu.vector_store %arg4[%c0_25, %c0_26, %c0_27], %74 {strides = array<i32>} : memref<5x8x128xf32, #tpu.memory_space<vmem>>, vector<1x8x128xf32>,
    %c1_28 = arith.constant 1 : index
    %c0_29 = arith.constant 0 : index
    %c0_30 = arith.constant 0 : index
    %75 = vector.load %arg4[%c1_28, %c0_29, %c0_30] : memref<5x8x128xf32, #tpu.memory_space<vmem>>, vector<1x8x128xf32>
    %76 = vector.shape_cast %75 : vector<1x8x128xf32> to vector<8x128xf32>
    %77 = vector.shape_cast %62 : vector<8x128xf32> to vector<1x8x128xf32>
    tpu.vector_store %arg4[%c1_28, %c0_29, %c0_30], %77 {strides = array<i32>} : memref<5x8x128xf32, #tpu.memory_space<vmem>>, vector<1x8x128xf32>,
    %c2_31 = arith.constant 2 : index
    %c0_32 = arith.constant 0 : index
    %c0_33 = arith.constant 0 : index
    %78 = vector.load %arg4[%c2_31, %c0_32, %c0_33] : memref<5x8x128xf32, #tpu.memory_space<vmem>>, vector<1x8x128xf32>
    %79 = vector.shape_cast %78 : vector<1x8x128xf32> to vector<8x128xf32>
    %80 = vector.shape_cast %65 : vector<8x128xf32> to vector<1x8x128xf32>
    tpu.vector_store %arg4[%c2_31, %c0_32, %c0_33], %80 {strides = array<i32>} : memref<5x8x128xf32, #tpu.memory_space<vmem>>, vector<1x8x128xf32>,
    %c3_34 = arith.constant 3 : index
    %c0_35 = arith.constant 0 : index
    %c0_36 = arith.constant 0 : index
    %81 = vector.load %arg4[%c3_34, %c0_35, %c0_36] : memref<5x8x128xf32, #tpu.memory_space<vmem>>, vector<1x8x128xf32>
    %82 = vector.shape_cast %81 : vector<1x8x128xf32> to vector<8x128xf32>
    %83 = vector.shape_cast %68 : vector<8x128xf32> to vector<1x8x128xf32>
    tpu.vector_store %arg4[%c3_34, %c0_35, %c0_36], %83 {strides = array<i32>} : memref<5x8x128xf32, #tpu.memory_space<vmem>>, vector<1x8x128xf32>,
    %c4_37 = arith.constant 4 : index
    %c0_38 = arith.constant 0 : index
    %c0_39 = arith.constant 0 : index
    %84 = vector.load %arg4[%c4_37, %c0_38, %c0_39] : memref<5x8x128xf32, #tpu.memory_space<vmem>>, vector<1x8x128xf32>
    %85 = vector.shape_cast %84 : vector<1x8x128xf32> to vector<8x128xf32>
    %86 = vector.shape_cast %71 : vector<8x128xf32> to vector<1x8x128xf32>
    tpu.vector_store %arg4[%c4_37, %c0_38, %c0_39], %86 {strides = array<i32>} : memref<5x8x128xf32, #tpu.memory_space<vmem>>, vector<1x8x128xf32>,
    return
  }
  func.func @transform_0(%arg0: i32) -> i32 {
    %c0_i32 = arith.constant 0 : i32
    %c0_i32_0 = arith.constant 0 : i32
    return %c0_i32 : i32
  }
  func.func @transform_1(%arg0: i32) -> (i32, i32, i32) {
    %c0_i32 = arith.constant 0 : i32
    %c0_i32_0 = arith.constant 0 : i32
    %c0_i32_1 = arith.constant 0 : i32
    return %c0_i32, %arg0, %c0_i32_0 : i32, i32, i32
  }
  func.func @transform_2(%arg0: i32) -> (i32, i32, i32) {
    %c0_i32 = arith.constant 0 : i32
    %c0_i32_0 = arith.constant 0 : i32
    %c0_i32_1 = arith.constant 0 : i32
    return %c0_i32, %arg0, %c0_i32_0 : i32, i32, i32
  }
  func.func @transform_3(%arg0: i32) -> (i32, i32, i32) {
    %c0_i32 = arith.constant 0 : i32
    %c0_i32_0 = arith.constant 0 : i32
    %c0_i32_1 = arith.constant 0 : i32
    return %c0_i32, %arg0, %c0_i32_0 : i32, i32, i32
  }
}

</mosaic_0001>

<bundles_post_ra>
// kernel: cartpole_dx.1
= control target key start
LH: loop header
LB: loop body
LE: loop exit
PB: predicated region body
PF: predicated region fallthrough
CT: control target
= control target key end

     0   :  { %8 = vsyncpa [#allocation3], 0  ;;  %s479_s15 = smov [#allocation2]   ;;  %s655_s0 = inlined_call_operand.vmem [shape: f32[6], index: 0, kind: input, shape index: {}]   ;;  %s656_s1 = inlined_call_operand.vmem [shape: f32[5,8,128], index: 1, kind: input, shape index: {}]   ;;  %s657_s2 = inlined_call_operand.vmem [shape: f32[1,8,128], index: 2, kind: input, shape index: {}]   ;;  %s658_s3 = inlined_call_operand.vmem [shape: f32[5,8,128], index: 3, kind: output, shape index: {}]  }
   0x1   :  { %s14_s14 = sshll.u32 %s655_s0, 4  ;;  %s15_s14 = int_to_ptr.vmem [resolvable:$true] %s14_s14 }
   0x2   :  { %17 = dma.vmem_to_smem %s15_s14, 16, %s479_s15, [#allocation3]  }
   0x3   :  { %477 = dma.done.wait [#allocation3], 16  }
   0x4   :  { %478 = vsyncadd [#allocation3], 4294967280 }
   0x5   :  { %26 = sfence }
   0x6   :  { %v27_v0 = vld [vmem:[%s656_s1] sm:$0xff]  ;;  %v516_v1 = vld [vmem:[%s656_s1 + $0x8] sm:$0xff]  ;;  %s437_s0 = sld [smem:[#allocation2 + $0x1]]  ;;  %v537_v11 = vld [vmem:[%s656_s1 + $0x10] sm:$0xff]  ;;  %v480_v32 = vmov 683565275  }
   0x7   :  { %v407_v2 = vmul.f32 0.05, %v516_v1  ;;  %v522_v3 = vld [vmem:[%s656_s1 + $0x20] sm:$0xff]  ;;  %s440_s24 = sld [smem:[#allocation2 + $0x4]]  ;;  %v547_v18 = vld [vmem:[%s656_s1 + $0x18] sm:$0xff] }
   0x8   :  { %v525_v4 = vmul.f32 0.05, %v522_v3  ;;  %s438_s25 = sld [smem:[#allocation2 + $0x2]]  ;;  %v36_v8 = vld [vmem:[%s657_s2] sm:$0xff]  ;;  %v481_v34 = vmov 2475754826  }
   0x9   :  { %v408_v5 = vadd.f32 %v407_v2, %v27_v0  ;;  %s541_s30 = sld [smem:[#allocation2]]  ;;  %v442_v15 = vclamps-f32 %v36_v8, 100.0  ;;  %v482_v38 = vmov 2131351028   ;;  %v483_v41 = vmov 2102212464  }
   0xa   :  { %v99_v6 = vand.u32 2139095040, %v525_v4  ;;  %v96_v13 = vand.u32 2147483647, %v525_v4  ;;  %s562_s1 = sld [smem:[#allocation2 + $0x3]]  ;;  %v484_v49 = vmov 920167782  }
   0xb   :  { %419 = vst [vmem:[%s658_s3] sm:$0xff] %v408_v5  ;;  %v485_v53 = vmov 1326507024   ;;  %s576_s5 = sld [smem:[#allocation2 + $0x5]] }
   0xc   :  { %v100_v7 = vshrl.u32 %v99_v6, 23  ;;  %v45_v9 = vstv %s437_s0  ;;  %v103_v21 = vand.u32 8388607, %v96_v13 }
   0xd   :  { %v46_v12 = vmul.f32 %v522_v3, %v45_v9  ;;  %v52_v17 = vstv %s440_s24 }
   0xe   :  { %v443_v10 = vadd.s32 4294967169, %v100_v7  ;;  %v53_v19 = vmul.f32 %v537_v11, %v52_v17  ;;  %v50_v23 = vstv %s438_s25  ;;  %v104_v30 = vor.u32 8388608, %v103_v21 }
   0xf   :  { %v47_v16 = vmul.f32 %v522_v3, %v46_v12  ;;  %v56_v31 = vstv %s541_s30 }
  0x10   :  { %v106_v14 = vadd.s32 1, %v443_v10  ;;  %v54_v24 = vmul.f32 %v537_v11, %v53_v19  ;;  %v57_v43 = vmul.f32 %v547_v18, %v56_v31  ;;  %v569_v45 = vshll.u32 %v104_v30, 8 }
  0x11   :  { %v48_v20 = vmul.f32 %v547_v18, %v47_v16  ;;  %v60_v7 = vstv %s562_s1 }
  0x12   :  { %vm107_vm0 = vcmp.gt.s32.totalorder %v106_v14, 0  ;;  %v55_v27 = vsub.f32 1.3333334, %v54_v24  ;;  %v145_v9 = vand.u32 65535, %v569_v45  ;;  %v146_v10 = vshrl.u32 %v569_v45, 16 }
  0x13   :  { %v108_v22 = vsel %vm107_vm0, %v106_v14, 0  ;;  %v49_v26 = vadd.f32 %v442_v15, %v48_v20  ;;  %vm98_vm0 = vcmp.lt.s32.totalorder %v525_v4, 0 }
  0x14   :  { %v110_v25 = vand.u32 31, %v108_v22  ;;  %461 = vrcp.f32 %v55_v27  ;;  %v559_v36 = vshrl.u32 %v108_v22, 5  ;;  %vm67_vm1 = vweird.f32 %v55_v27 }
  0x15   :  { %v556_v29 = vmul.f32 %v50_v23, %v49_v26  ;;  %v71_v56 = vand.u32 2147483647, %v55_v27  ;;  %v73_v59 = vand.u32 2147483648, %v55_v27 }
  0x16   :  { %v554_v28 = vsub.s32 32, %v110_v25  ;;  %v113_v33 = vshll.u32 %v480_v32, %v110_v25  ;;  %v116_v35 = vshll.u32 %v481_v34, %v110_v25  ;;  %v119_v39 = vshll.u32 %v482_v38, %v110_v25 }
  0x17   :  { %v58_v44 = vmul.f32 %v537_v11, %v556_v29  ;;  %v122_v48 = vshll.u32 %v483_v41, %v110_v25  ;;  %v125_v52 = vshll.u32 %v484_v49, %v110_v25  ;;  %vm128_vm2 = vcmp.lt.s32.totalorder %v559_v36, 1 }
  0x18   :  { %v114_v37 = vshrl.u32 %v481_v34, %v554_v28  ;;  %v117_v40 = vshrl.u32 %v482_v38, %v554_v28  ;;  %v120_v42 = vshrl.u32 %v483_v41, %v554_v28  ;;  %v123_v50 = vshrl.u32 %v484_v49, %v554_v28 }
  0x19   :  { %v126_v54 = vshrl.u32 %v485_v53, %v554_v28  ;;  %vm130_vm3 = vcmp.lt.s32.totalorder %v559_v36, 3  ;;  %vm131_vm4 = vcmp.lt.s32.totalorder %v559_v36, 4  ;;  %vm129_vm5 = vcmp.lt.s32.totalorder %v559_v36, 2 }
  0x1a   :  { %v115_v46 = vor.u32 %v114_v37, %v113_v33  ;;  %v571_v47 = vor.u32 %v117_v40, %v116_v35  ;;  %v121_v51 = vor.u32 %v120_v42, %v119_v39  ;;  %v462_v55 = vpop.eup %461  ;;  %v124_v57 = vor.u32 %v123_v50, %v122_v48 }
  0x1b   :  { %v63_v58 = vmul.f32 %v462_v55, %v55_v27  ;;  %v127_v60 = vor.u32 %v126_v54, %v125_v52  ;;  %v59_v61 = vsub.f32 %v57_v43, %v58_v44  ;;  %vm68_vm6 = vweird.f32 %v462_v55 }
  0x1c   :  { %v136_v62 = vsel %vm128_vm2, %v115_v46, %v571_v47  ;;  %v137_v63 = vsel %vm131_vm4, %v124_v57, 920167782  ;;  %v140_v5 = vsel %vm128_vm2, %v571_v47, %v121_v51  ;;  %vm602_vm7 = vmor %vm67_vm1, %vm68_vm6  ;;  %vm72_vm8 = vcmp.eq.f32.partialorder %v71_v56, 8.507059e+37 }
  0x1d   :  { %v64_v0 = vsub.f32 1.0, %v63_v58  ;;  %v138_v2 = vsel %vm130_vm3, %v121_v51, %v137_v63  ;;  %v141_v6 = vsel %vm131_vm4, %v127_v60, 1326507024  ;;  %v74_v19 = vor.u32 1.1754944e-38, %v73_v59 }
  0x1e   :  { %v139_v8 = vsel %vm129_vm5, %v136_v62, %v138_v2  ;;  %v142_v14 = vsel %vm130_vm3, %v124_v57, %v141_v6  ;;  %v61_v21 = vmul.f32 %v60_v7, %v59_v61  ;;  %v77_v25 = vstv %s576_s5 }
  0x1f   :  { %v65_v12 = vmul.f32 %v462_v55, %v64_v0  ;;  %v169_v15 = vand.u32 65535, %v139_v8  ;;  %v170_v16 = vshrl.u32 %v139_v8, 16  ;;  %v143_v20 = vsel %vm129_vm5, %v140_v5, %v142_v14 }
  0x20   :  { %v147_v23 = vand.u32 65535, %v143_v20  ;;  %v148_v24 = vshrl.u32 %v143_v20, 16  ;;  %v112_v26 = vshrl.u32 %v480_v32, %v554_v28  ;;  %v133_v38 = vsel %vm131_vm4, %v121_v51, 2102212464 }
  0x21   :  { %v66_v22 = vadd.f32 %v462_v55, %v65_v12  ;;  %v172_v30 = vmul.u32 %v170_v16, %v145_v9  ;;  %v173_v31 = vmul.u32 %v169_v15, %v146_v10  ;;  %v171_v39 = vmul.u32 %v169_v15, %v145_v9 }
  0x22   :  { %v149_v33 = vmul.u32 %v147_v23, %v145_v9  ;;  %v150_v34 = vmul.u32 %v148_v24, %v145_v9  ;;  %v151_v35 = vmul.u32 %v147_v23, %v146_v10  ;;  %v152_v42 = vmul.u32 %v148_v24, %v146_v10 }
  0x23   :  { %v70_v27 = vsel %vm602_vm7, %v462_v55, %v66_v22  ;;  %v175_v40 = vshll.u32 %v172_v30, 16  ;;  %v132_v28 = vsel %vm128_vm2, %v112_v26, %v115_v46  ;;  %v174_v32 = vmul.u32 %v170_v16, %v146_v10 }
  0x24   :  { %v75_v37 = vsel %vm72_vm8, %v74_v19, %v70_v27  ;;  %v153_v43 = vshll.u32 %v150_v34, 16  ;;  %v155_v44 = vshll.u32 %v151_v35, 16  ;;  %v177_v48 = vshll.u32 %v173_v31, 16 }
  0x25   :  { %v614_v41 = vmul.f32 %v75_v37, %v61_v21  ;;  %v134_v50 = vsel %vm130_vm3, %v571_v47, %v133_v38  ;;  %v154_v52 = vshrl.u32 %v150_v34, 16  ;;  %v486_v53 = vmov 0  }
  0x26   :  { %vm157_vm9 = vc.u32 %v149_v33, %v153_v43  ;;  %v159_v51 = vadd.s32 %v153_v43, %v149_v33  ;;  %vm179_vm10 = vc.u32 %v171_v39, %v175_v40  ;;  %v181_v55 = vadd.s32 %v175_v40, %v171_v39 }
  0x27   :  { %v78_v49 = vmul.f32 %v77_v25, %v614_v41  ;;  %v158_v54 = vsel %vm157_vm9, 1, %v486_v53  ;;  %v180_v46 = vsel %vm179_vm10, 1, %v486_v53  ;;  %v176_v59 = vshrl.u32 %v172_v30, 16 }
  0x28   :  { %v160_v57 = vadd.s32 %v158_v54, %v152_v42  ;;  %vm161_vm11 = vc.u32 %v159_v51, %v155_v44  ;;  %v182_v60 = vadd.s32 %v180_v46, %v174_v32  ;;  %vm183_vm12 = vc.u32 %v181_v55, %v177_v48 }
  0x29   :  { %v79_v56 = vmul.f32 %v537_v11, %v78_v49  ;;  %v162_v58 = vsel %vm161_vm11, 1, %v486_v53  ;;  %v156_v62 = vshrl.u32 %v151_v35, 16  ;;  %v184_v63 = vsel %vm183_vm12, 1, %v486_v53 }
  0x2a   :  { %v164_v47 = vadd.s32 %v162_v58, %v160_v57  ;;  %v178_v0 = vshrl.u32 %v173_v31, 16  ;;  %v186_v2 = vadd.s32 %v184_v63, %v182_v60  ;;  %v185_v7 = vadd.s32 %v181_v55, %v177_v48 }
  0x2b   :  { %v80_v61 = vsub.f32 %v556_v29, %v79_v56  ;;  %v135_v8 = vsel %vm129_vm5, %v132_v28, %v134_v50  ;;  %v82_v23 = vmul.f32 %v547_v18, %v547_v18  ;;  %v417_v28 = vmul.f32 0.05, %v614_v41 }
  0x2c   :  { %v165_v6 = vadd.s32 %v164_v47, %v154_v52  ;;  %v187_v9 = vadd.s32 %v186_v2, %v176_v59  ;;  %v189_v29 = vmul.u32 %v569_v45, %v135_v8  ;;  %vm97_vm1 = vcmp.le.f32.partialorder %v96_v13, 0.7853982 }
  0x2d   :  { %v409_v5 = vmul.f32 0.05, %v80_v61  ;;  %v418_v48 = vadd.f32 %v522_v3, %v417_v28  ;;  %vm239_vm11 = vweird.f32 %v525_v4 }
  0x2e   :  { %v166_v12 = vadd.s32 %v165_v6, %v156_v62  ;;  %v188_v14 = vadd.s32 %v187_v9, %v178_v0 }
  0x2f   :  { %v410_v10 = vadd.f32 %v516_v1, %v409_v5  ;;  %v81_v1 = vmul.f32 %v537_v11, %v537_v11  ;;  %452 = vst [vmem:[%s658_s3 + $0x20] sm:$0xff] %v418_v48 }
  0x30   :  { %vm191_vm13 = vc.u32 %v166_v12, %v185_v7  ;;  %v192_v15 = vadd.s32 1, %v188_v14  ;;  %v190_v30 = vadd.s32 %v185_v7, %v166_v12 }
  0x31   :  { %449 = vst [vmem:[%s658_s3 + $0x8] sm:$0xff] %v410_v10  ;;  %v83_v45 = vadd.f32 %v82_v23, %v81_v1 }
  0x32   :  { %v193_v16 = vsel %vm191_vm13, %v192_v15, %v188_v14 }
  0x33   :  { %v194_v17 = vadd.s32 %v193_v16, %v189_v29  ;;  %v84_v35 = vmax.f32 %v83_v45, 1e-12 }
  0x35   :  { %v195_v19 = vadd.s32 536870912, %v194_v17  ;;  %463 = vrsqrt.f32 %v84_v35  ;;  %vm91_vm2 = vweird.f32 %v84_v35 }
  0x37   :  { %v196_v20 = vshrl.u32 %v195_v19, 30 }
  0x39   :  { %v197_v21 = vshll.u32 %v196_v20, 30  ;;  %v220_v50 = vsub.s32 4, %v196_v20 }
  0x3b   :  { %v198_v36 = vsub.s32 %v194_v17, %v197_v21  ;;  %v464_v49 = vpop.eup %463  ;;  %v221_v54 = vsel %vm98_vm0, %v220_v50, %v196_v20 }
  0x3c   :  { %v86_v52 = vmul.f32 %v464_v49, %v84_v35  ;;  %v223_v3 = vsel %vm97_vm1, 0, %v221_v54  ;;  %vm92_vm3 = vweird.f32 %v464_v49 }
  0x3d   :  { %vm199_vm14 = vcmp.lt.s32.totalorder %v198_v36, 0  ;;  %v200_v22 = vsub.s32 0, %v198_v36  ;;  %v395_v60 = vadd.s32 3, %v223_v3  ;;  %v240_v0 = vand.u32 3, %v223_v3  ;;  %vm93_vm6 = vmor %vm91_vm2, %vm92_vm3 }
  0x3e   :  { %v87_v56 = vmul.f32 %v464_v49, %v86_v52 }
  0x3f   :  { %v201_v24 = vsel %vm199_vm14, %v200_v22, %v198_v36  ;;  %v396_v2 = vand.u32 3, %v395_v60  ;;  %vm245_vm4 = vcmp.eq.s32.totalorder %v240_v0, 2  ;;  %vm241_vm7 = vcmp.lt.s32.totalorder %v240_v0, 2 }
  0x40   :  { %v202_v25 = vclz %v201_v24  ;;  %v88_v61 = vmul.f32 0.5, %v87_v56  ;;  %vm242_vm8 = vcmp.eq.s32.totalorder %v240_v0, 0 }
  0x41   :  { %vm401_vm5 = vcmp.eq.s32.totalorder %v396_v2, 2  ;;  %vm398_vm9 = vcmp.eq.s32.totalorder %v396_v2, 0  ;;  %vm397_vm10 = vcmp.lt.s32.totalorder %v396_v2, 2 }
  0x42   :  { %v444_v26 = vadd.s32 4294967294, %v202_v25  ;;  %v89_v5 = vsub.f32 1.5, %v88_v61 }
  0x44   :  { %vm445_vm15 = vcmp.lt.s32.totalorder %v444_v26, 0  ;;  %v90_v10 = vmul.f32 %v464_v49, %v89_v5 }
  0x45   :  { %v205_v31 = vsel %vm445_vm15, 0, %v444_v26 }
  0x46   :  { %v206_v27 = vsub.s32 32, %v205_v31  ;;  %v207_v33 = vshll.u32 %v198_v36, %v205_v31  ;;  %v210_v34 = vsub.s32 4294967266, %v205_v31  ;;  %v94_v17 = vsel %vm93_vm6, %v464_v49, %v90_v10 }
  0x48   :  { %v208_v37 = vshrl.u32 %v190_v30, %v206_v27  ;;  %v211_v38 = vadd.s32 127, %v210_v34 }
  0x4a   :  { %v209_v39 = vor.u32 %v208_v37, %v207_v33  ;;  %v212_v40 = vshll.u32 %v211_v38, 23 }
  0x4c   :  { %v213_v42 = vor.u32 4788187, %v212_v40  ;;  %v216_v43 = vcvt.s32.f32 %v209_v39 }
  0x4e   :  { %v214_v44 = vand.u32 2147483647, %v213_v42 }
  0x50   :  { %v217_v32 = vmul.f32 %v216_v43, %v214_v44 }
  0x52   :  { %v218_v51 = vxor.u32 2147483648, %v217_v32 }
  0x54   :  { %v219_v53 = vsel %vm98_vm0, %v218_v51, %v217_v32 }
  0x55   :  { %v222_v41 = vsel %vm97_vm1, %v525_v4, %v219_v53 }
  0x56   :  { %v224_v55 = vmul.f32 %v222_v41, %v222_v41 }
  0x58   :  { %v225_v57 = vmul.f32 -0.001358992, %v224_v55  ;;  %v232_v46 = vmul.f32 -0.00019511016, %v224_v55 }
  0x5a   :  { %v226_v58 = vadd.f32 0.041655596, %v225_v57  ;;  %v233_v59 = vadd.f32 0.008332121, %v232_v46 }
  0x5c   :  { %v227_v13 = vmul.f32 %v226_v58, %v224_v55  ;;  %v234_v62 = vmul.f32 %v233_v59, %v224_v55 }
  0x5e   :  { %v228_v47 = vadd.f32 -0.4999988, %v227_v13  ;;  %v235_v63 = vadd.f32 -0.16666654, %v234_v62 }
  0x60   :  { %v229_v6 = vmul.f32 %v228_v47, %v224_v55  ;;  %v236_v7 = vmul.f32 %v235_v63, %v224_v55 }
  0x62   :  { %v230_v8 = vadd.f32 1.0, %v229_v6  ;;  %v237_v9 = vadd.f32 1.0, %v236_v7 }
  0x64   :  { %v238_v12 = vmul.f32 %v237_v9, %v222_v41  ;;  %v246_v14 = vxor.u32 2147483648, %v230_v8 }
  0x66   :  { %v243_v29 = vxor.u32 2147483648, %v238_v12  ;;  %v247_v15 = vsel %vm245_vm4, %v246_v14, %v238_v12  ;;  %v403_v16 = vsel %vm401_vm5, %v246_v14, %v238_v12 }
  0x68   :  { %v244_v19 = vsel %vm242_vm8, %v230_v8, %v243_v29  ;;  %v400_v20 = vsel %vm398_vm9, %v230_v8, %v243_v29 }
  0x69   :  { %v248_v21 = vsel %vm241_vm7, %v244_v19, %v247_v15  ;;  %v404_v36 = vsel %vm397_vm10, %v400_v20, %v403_v16 }
  0x6a   :  { %v249_v22 = vsel %vm239_vm11, nan, %v248_v21  ;;  %v405_v1 = vsel %vm239_vm11, nan, %v404_v36 }
  0x6b   :  { %v250_v23 = vmul.f32 %v249_v22, %v94_v17  ;;  %v406_v24 = vmul.f32 %v405_v1, %v94_v17 }
  0x6d   :  { %v411_v25 = vmul.f32 %v537_v11, %v250_v23  ;;  %v412_v26 = vmul.f32 %v547_v18, %v406_v24  ;;  %v414_v45 = vmul.f32 %v547_v18, %v250_v23  ;;  %v415_v30 = vmul.f32 %v537_v11, %v406_v24 }
  0x6f   :  { %v413_v31 = vsub.f32 %v411_v25, %v412_v26  ;;  %v416_v27 = vadd.f32 %v415_v30, %v414_v45 }
  0x71   :  { %450 = vst [vmem:[%s658_s3 + $0x10] sm:$0xff] %v413_v31 }
  0x72   :  { %451 = vst [vmem:[%s658_s3 + $0x18] sm:$0xff] %v416_v27 }
  0x73   :  { %432 = vsyncpa [#allocation3], 1 }

</bundles_post_ra>
